<compile_context>
chip_gen: v7x
topology: tpu7x:2x2x1
jax: 0.10.0
libtpu: 0.0.40
codegen_flags: <defaults>
</compile_context>

<pallas_src>
from functools import partial

import jax
import jax.numpy as jnp
import numpy as np
from jax.experimental import pallas as pl
from jax.experimental.pallas import tpu as pltpu


def _round_up(x, m):
    return ((x + m - 1) // m) * m


def _round_down(x, m):
    return (x // m) * m


def _bn_quant_kernel(x_ref, kl_ref, o_ref, *, inv_shift, lower, upper):
    """x_ref: (row_blk, col_blk) native dtype; kl_ref: (2, row_blk, 1) f32 = [k; l]."""
    x = x_ref[...].astype(jnp.float32)     # in-kernel cast: free (VPU slack), avoids
                                           # a wrapper-side HBM conversion pass.
    k = kl_ref[0]                          # (row_blk, 1), lane-broadcast below
    l = kl_ref[1]
    y = x * k + l                          # per-row affine (VPU)
    y = jnp.floor(y * inv_shift)           # ">> d": exact * 2**-d, then floor
    y = jnp.clip(y, lower, upper)          # clip8 (unsigned or signed range)
    if jnp.issubdtype(o_ref.dtype, jnp.integer):
        # route through int32 so the f32 -> narrow-int cast lowers cleanly
        o_ref[...] = y.astype(jnp.int32).astype(o_ref.dtype)
    else:
        o_ref[...] = y.astype(o_ref.dtype)


def pulp_nn_batchnorm(x_nchw, k, l, d, *, bit_o=8, sgn_o=False,
                      out_dtype=None, block_bytes=4 << 20):
    """x_nchw: (N, C, H, W); k, l: (1, C, 1, 1); d: python int shift."""
    N, C, H, W = x_nchw.shape
    R, M = N * C, H * W

    # Clip range.
    if sgn_o:
        upper, lower = float(2 ** (bit_o - 1) - 1), float(-(2 ** (bit_o - 1)))
    else:
        upper, lower = float(2 ** bit_o - 1), 0.0
    inv_shift = float(2.0 ** (-int(d)))

    # Output dtype: default matches the torch module (same dtype as the input).
    # Narrow integer outputs cut writeback 4x; pick a signedness that can hold
    # the clip range (plain int8 would wrap for the unsigned [0, 255] path).
    out_dtype = jnp.dtype(x_nchw.dtype) if out_dtype is None else jnp.dtype(out_dtype)
    if jnp.issubdtype(out_dtype, jnp.signedinteger) and not sgn_o:
        ii = jnp.iinfo(out_dtype)
        if upper > ii.max:
            out_dtype = jnp.dtype(f"uint{ii.bits}")
    elif jnp.issubdtype(out_dtype, jnp.unsignedinteger) and sgn_o:
        out_dtype = jnp.dtype(f"int{jnp.iinfo(out_dtype).bits}")

    # Glue: pure reshapes only (no transpose, no dtype cast -> no extra HBM pass).
    x2 = x_nchw.reshape(R, M)
    k_rows = jnp.tile(jnp.asarray(k, jnp.float32).reshape(C, 1), (N, 1))   # (R, 1)
    l_rows = jnp.tile(jnp.asarray(l, jnp.float32).reshape(C, 1), (N, 1))   # (R, 1)
    kl = jnp.stack([k_rows, l_rows], axis=0)                               # (2, R, 1)

    # ---- block sizing -------------------------------------------------------
    in_bpe = np.dtype(x2.dtype).itemsize
    out_bpe = out_dtype.itemsize
    bpe = max(in_bpe, out_bpe)
    row_unit = max(8, 32 // min(in_bpe, out_bpe))   # sublane tile of narrowest dtype

    # Lane-dense column blocks (multiple of 128), capped so that even the
    # minimum-height (row_unit) block stays within the per-block byte budget
    # (this is the v5e 16 MiB-default / int8 row_unit interaction fix).
    col_cap = max(128, _round_down(block_bytes // (row_unit * bpe), 128))
    col_blk = min(col_cap, _round_up(M, 128))
    if col_blk >= M:
        col_blk = M                 # full dim is always a legal block shape
    # Row blocks: multiple of the sublane unit, filling the remaining budget.
    row_cap = max(row_unit, _round_down(block_bytes // (col_blk * bpe), row_unit))
    row_blk = min(row_cap, _round_up(R, row_unit))
    if row_blk >= R:
        row_blk = R

    # v7x megacore: ensure the parallel grid has >= 2 steps when the tensor
    # allows it (prefer splitting the leading/row axis).
    if pl.cdiv(R, row_blk) * pl.cdiv(M, col_blk) < 2:
        if R >= 2 * row_unit and row_blk > row_unit:
            row_blk = max(row_unit, _round_down(row_blk // 2, row_unit))
        elif M >= 2 * 128 and col_blk > 128:
            col_blk = max(128, _round_down(col_blk // 2, 128))
        # else: genuinely tiny tensor; a (1, 1) grid is acceptable.

    grid = (pl.cdiv(R, row_blk), pl.cdiv(M, col_blk))

    # Explicit VMEM budget: double-buffered (input + output + padded param)
    # blocks plus headroom, clamped well under every generation's physical VMEM.
    blk = row_blk * col_blk
    kl_blk_bytes = 2 * _round_up(row_blk, 8) * 128 * 4    # (2, row_blk, 1) lane-padded
    need = 2 * (blk * in_bpe + blk * out_bpe + kl_blk_bytes)
    vmem_limit = int(min(max(need + need // 4 + (1 << 20), 16 << 20), 48 << 20))

    kernel = partial(_bn_quant_kernel, inv_shift=inv_shift, lower=lower, upper=upper)

    out2 = pl.pallas_call(
        kernel,
        out_shape=jax.ShapeDtypeStruct((R, M), out_dtype),
        grid=grid,
        in_specs=[
            pl.BlockSpec((row_blk, col_blk), lambda i, j: (i, j)),   # x tile
            pl.BlockSpec((2, row_blk, 1), lambda i, j: (0, i, 0)),   # [k; l] per row
        ],
        out_specs=pl.BlockSpec((row_blk, col_blk), lambda i, j: (i, j)),
        compiler_params=pltpu.CompilerParams(
            dimension_semantics=("parallel", "parallel"),
            vmem_limit_bytes=vmem_limit),
    )(x2, kl)

    return out2.reshape(N, C, H, W)


def _reference(x, k, l, d, bit_o=8, sgn_o=False):
    # Mirrors the torch module's float32 op order exactly.
    x = np.asarray(x, dtype=np.float32)
    k = np.asarray(k, dtype=np.float32)
    l = np.asarray(l, dtype=np.float32)
    y = x * k + l
    y = np.floor(y * np.float32(2.0 ** (-int(d))))
    if sgn_o:
        upper, lower = 2 ** (bit_o - 1) - 1, -(2 ** (bit_o - 1))
    else:
        upper, lower = 2 ** bit_o - 1, 0
    return np.clip(y, lower, upper)


if __name__ == "__main__":
    # Module defaults: Cin=8, Kh=Kw=3, BitA=BitW=BitO=8, groups=1, SgnO=False
    Cin, Kh, Kw = 8, 3, 3
    BitA, BitW, BitO = 8, 8, 8
    groups, SgnO = 1, False
    N, H, W = 2, 16, 16

    key = jax.random.PRNGKey(0)
    kk, kl_, kx = jax.random.split(key, 3)

    # Deterministic synthetic parameters (same shapes/ranges as the torch init).
    k_param = jnp.round(
        jax.random.uniform(kk, (1, Cin, 1, 1), minval=0.0, maxval=2.0 ** 8)
    ).astype(jnp.float32)

    th = int(2 ** (BitA + BitW + np.log2(int(Cin / groups) * Kh * Kw) + 4 - 2 - 1))
    th = min(th, 2 ** 24)
    l_param = jax.random.randint(kl_, (1, Cin, 1, 1), -th, th).astype(jnp.float32)

    d = int(BitA + BitW + np.log2(int(Cin / groups) * Kh * Kw) + 3 - BitO)

    # Input: mimic a conv accumulator (integer-valued float32), NCHW.
    x = jax.random.randint(kx, (N, Cin, H, W), -2 ** 15, 2 ** 15).astype(jnp.float32)

    # (1) module defaults: unsigned clip, float output (same dtype as torch).
    out = jax.block_until_ready(
        pulp_nn_batchnorm(x, k_param, l_param, d, bit_o=BitO, sgn_o=SgnO))
    ref = _reference(x, k_param, l_param, d, bit_o=BitO, sgn_o=SgnO)
    np.testing.assert_array_equal(np.asarray(out), ref)

    # (2) signed clip + narrow int8 output (4x less HBM writeback).
    out_s8 = jax.block_until_ready(
        pulp_nn_batchnorm(x, k_param, l_param, d, bit_o=BitO, sgn_o=True,
                          out_dtype=jnp.int8))
    ref_s = _reference(x, k_param, l_param, d, bit_o=BitO, sgn_o=True)
    assert out_s8.dtype == jnp.int8
    np.testing.assert_array_equal(np.asarray(out_s8).astype(np.float32),
                                  ref_s.astype(np.float32))

    # (3) unsigned clip + narrow output: int8 is auto-promoted to uint8 so the
    #     [0, 255] range can never wrap.
    out_u8 = jax.block_until_ready(
        pulp_nn_batchnorm(x, k_param, l_param, d, bit_o=BitO, sgn_o=False,
                          out_dtype=jnp.int8))
    assert out_u8.dtype == jnp.uint8
    np.testing.assert_array_equal(np.asarray(out_u8).astype(np.float32),
                                  ref.astype(np.float32))

    print("KERNEL_OK")
</pallas_src>

<mosaic_0001>
module attributes {stable_mosaic.version = 11 : i64} {
  func.func @_bn_quant_kernel(%arg0: i32, %arg1: i32, %arg2: memref<8x256xf32, #tpu.memory_space<vmem>>, %arg3: memref<2x8x1xf32, #tpu.memory_space<vmem>>, %arg4: memref<8x256xf32, #tpu.memory_space<vmem>>) attributes {dimension_semantics = [#tpu.dimension_semantics<parallel>, #tpu.dimension_semantics<parallel>], iteration_bounds = array<i64: 2, 1>, scalar_prefetch = 0 : i64, scratch_operands = 0 : i64, tpu.core_type = #tpu.core_type<tc>, window_params = [{transform_indices = @transform_0, window_bounds = array<i64: 8, 256>}, {transform_indices = @transform_1, window_bounds = array<i64: 2, 8, 1>}, {transform_indices = @transform_2, window_bounds = array<i64: 8, 256>}]} {
    %c0 = arith.constant 0 : index
    %c0_0 = arith.constant 0 : index
    %0 = vector.load %arg2[%c0, %c0_0] : memref<8x256xf32, #tpu.memory_space<vmem>>, vector<8x256xf32>
    %c0_1 = arith.constant 0 : index
    %c0_2 = arith.constant 0 : index
    %c0_3 = arith.constant 0 : index
    %1 = vector.load %arg3[%c0_1, %c0_2, %c0_3] : memref<2x8x1xf32, #tpu.memory_space<vmem>>, vector<1x8x1xf32>
    %2 = vector.shape_cast %1 : vector<1x8x1xf32> to vector<8x1xf32>
    %c1 = arith.constant 1 : index
    %c0_4 = arith.constant 0 : index
    %c0_5 = arith.constant 0 : index
    %3 = vector.load %arg3[%c1, %c0_4, %c0_5] : memref<2x8x1xf32, #tpu.memory_space<vmem>>, vector<1x8x1xf32>
    %4 = vector.shape_cast %3 : vector<1x8x1xf32> to vector<8x1xf32>
    %5 = vector.broadcast %2 : vector<8x1xf32> to vector<8x256xf32>
    %6 = arith.mulf %0, %5 : vector<8x256xf32>
    %7 = vector.broadcast %4 : vector<8x1xf32> to vector<8x256xf32>
    %8 = arith.addf %6, %7 : vector<8x256xf32>
    %cst = arith.constant 7.62939453E-6 : f32
    %9 = vector.broadcast %cst : f32 to vector<8x256xf32>
    %10 = arith.mulf %8, %9 : vector<8x256xf32>
    %11 = math.floor %10 : vector<8x256xf32>
    %cst_6 = arith.constant 0.000000e+00 : f32
    %cst_7 = arith.constant 2.550000e+02 : f32
    %12 = vector.broadcast %cst_6 : f32 to vector<8x256xf32>
    %13 = arith.maximumf %12, %11 : vector<8x256xf32>
    %14 = vector.broadcast %cst_7 : f32 to vector<8x256xf32>
    %15 = arith.minimumf %14, %13 : vector<8x256xf32>
    %c0_8 = arith.constant 0 : index
    %c0_9 = arith.constant 0 : index
    %16 = vector.load %arg4[%c0_8, %c0_9] : memref<8x256xf32, #tpu.memory_space<vmem>>, vector<8x256xf32>
    tpu.vector_store %arg4[%c0_8, %c0_9], %15 {strides = array<i32>} : memref<8x256xf32, #tpu.memory_space<vmem>>, vector<8x256xf32>,
    return
  }
  func.func @transform_0(%arg0: i32, %arg1: i32) -> (i32, i32) {
    %c0_i32 = arith.constant 0 : i32
    return %arg0, %arg1 : i32, i32
  }
  func.func @transform_1(%arg0: i32, %arg1: i32) -> (i32, i32, i32) {
    %c0_i32 = arith.constant 0 : i32
    %c0_i32_0 = arith.constant 0 : i32
    %c0_i32_1 = arith.constant 0 : i32
    return %c0_i32, %arg0, %c0_i32_0 : i32, i32, i32
  }
  func.func @transform_2(%arg0: i32, %arg1: i32) -> (i32, i32) {
    %c0_i32 = arith.constant 0 : i32
    return %arg0, %arg1 : i32, i32
  }
}

</mosaic_0001>

<bundles_post_ra>
// kernel: tpu_custom_call.1
= control target key start
LH: loop header
LB: loop body
LE: loop exit
PB: predicated region body
PF: predicated region fallthrough
CT: control target
= control target key end

     0   :  { %7 = vsyncpa [#allocation4], 0  ;;  %s670_s0 = inlined_call_operand.vmem [shape: f32[16,256], index: 0, kind: input, shape index: {}]   ;;  %s671_s1 = inlined_call_operand.vmem [shape: f32[2,16,1], index: 1, kind: input, shape index: {}]   ;;  %s672_s2 = inlined_call_operand.hbm [shape: f32[16,256], index: 2, kind: output, shape index: {}]  }
   0x1   :  { %9 = vsyncpa [#allocation4 + $0x1], 0  ;;  %s544_s9 = smov 0   ;;  %s546_s10 = smov 0  }
   0x2   :  { %s548_s11 = smov 0   ;;  %s550_s12 = smov 0  }
   0x3   :  { %s552_s13 = smov 0   ;;  %s554_s14 = smov 0  }
   0x4 LB: > { %s371_s15 = sadd.s32 4294967295, %s525_s14   ;;  %s372_s16 = sadd.s32 4294967294, %s525_s14   ;;  %s525_s14 = sphi %s554_s14, %s15_s14   ;;  %s521_s13 = sphi %s552_s13, %s679_s13   ;;  %s517_s12 = sphi %s550_s12, %s678_s12   ;;  %s513_s11 = sphi %s548_s11, %s677_s11   ;;  %s509_s10 = sphi %s546_s10, %s676_s10   ;;  %s505_s9 = sphi %s544_s9, %s675_s9  }
   0x5   : > { %s27_s17 = sadd.s32 1, %s521_s13  ;;  %s62_s18 = sadd.s32 1, %s513_s11 }
   0x6   : > { %p29_p0 = scmp.ge.s32.totalorder %s27_s17, 2  ;;  %p69_p1 = scmp.ne.s32.totalorder %s513_s11, %s509_s10 }
   0x7   : > { %p70_p2 = scmp.eq.s32.totalorder %s525_s14, 0  ;;  %p101_p3 = scmp.eq.s32.totalorder %s371_s15, 1 }
   0x8   : > { %s681_s17 = smov (%p29_p0, %s27_s17), 0  ;;  %p106_p6 = scmp.ne.s32.totalorder %s509_s10, %s505_s9 }
   0x9   : > { %p71_p4 = por %p70_p2, %p69_p1  ;;  %p583_p5 = por %p101_p3, %p69_p1 }
   0xa   : > { %s59_s20 = ssub.s32 %s521_s13, %s681_s17  ;;  %p107_p8 = scmp.eq.s32.totalorder %s372_s16, 1 }
   0xb   : > { %p60_p7 = scmp.eq.s32.totalorder %s59_s20, 0  ;;  %p374_p10 = scmp.ge.s32.totalorder %s525_s14, 2 }
   0xc   : > { %p594_p9 = por %p107_p8, %p106_p6 }
   0xd   : > { %s592_s21 = scalar_select %p60_p7, %s513_s11, %s62_s18  }
   0xe   : > { %123 = sbr.rel (%p374_p10) target bundleno = 28 (0x1c), region = 16 }
  0x15   : > { %139 = sbr.rel (!%p71_p4) target bundleno = 28 (0x1c), region = 24  ;;  %s141_s23 = sand.u32 (%p71_p4), 1, %s513_s11  }
  0x16   : > { %s376_s24 = sshll.u32 (%p71_p4), %s521_s13, 3  ;;  %s375_s25 = sshll.u32 (%p71_p4), %s141_s23, 4 }
  0x17   : > { %s145_s28 = scalar_lea.vmem (%p71_p4), %s671_s1, %s376_s24  ;;  %s143_s29 = scalar_lea.vmem (%p71_p4), [#allocation2], %s375_s25 }
  0x18   : > { %v175_v0 = vld [vmem:[%s145_s28] sm:$0xff] (%p71_p4)  ;;  %v177_v1 = vld [vmem:[%s145_s28 + $0x10] sm:$0xff] (%p71_p4) }
  0x19   : > { %176 = vst [vmem:[%s143_s29] sm:$0xff] (%p71_p4), %v175_v0  ;;  %178 = vst [vmem:[%s143_s29 + $0x8] sm:$0xff] (%p71_p4), %v177_v1 }
  0x1c PF: > { %p377_p11 = scmp.ge.s32.totalorder %s525_s14, 1  ;;  %p183_p12 = scmp.lt.s32.totalorder %s525_s14, 3 }
  0x1e   : > { %p184_p13 = pnand %p377_p11, %p183_p12 }
  0x1f   : > { %s190_s30 = sand.u32 (!%p184_p13), 1, %s509_s10   ;;  %v527_v2 = vmov (!%p184_p13), 0   ;;  %p221_p0 = scmp.lt.s32.totalorder (!%p184_p13), %s517_s12, 1 }
  0x20   : > { %187 = sbr.rel (%p184_p13) target bundleno = 191 (0xbf), region = 62  ;;  %446 = vset.pattern.permute.xlu0 (!%p184_p13), %v527_v2  ;;  %s378_s3 = sshll.u32 (!%p184_p13), %s190_s30, 4 }
  0x21   : > { %s192_s4 = scalar_lea.vmem (!%p184_p13), [#allocation2], %s378_s3  ;;  %s219_s16 = scalar_lea.vmem (!%p184_p13), [#allocation3], %s378_s3 }
  0x22   : > { %v233_v3 = vld [vmem:[%s192_s4] sm:$0xff] (!%p184_p13)  ;;  %v382_v4 = vld [vmem:[%s192_s4 + $0x8] sm:$0xff] (!%p184_p13)  ;;  %s277_s18 = sshll.u32 (!%p184_p13), %s219_s16, 4  ;;  %s389_s20 = sshll.u32 (!%p184_p13), %s517_s12, 8  ;;  %s622_s18 = int_to_ptr.vmem [resolvable:$true] %s277_s18 }
  0x23   : > { %238 = vperm.xlu0 (!%p184_p13), %446, %v233_v3   ;;  %s620_s25 = scalar_lea.hbm (!%p184_p13), %s672_s2, %s389_s20  ;;  %s261_s26 = scalar_lea.sflag (!%p184_p13), [#allocation4], %s190_s30 }
  0x24   : > { %s447_s27 = scalar_lea.vmem (!%p184_p13), %s622_s18, 256 }
  0x25   : > { %p448_p1 = scmp.ne.s32.totalorder (!%p184_p13), %s622_s18, %s447_s27 }
  0x27   : > { %245 = vperm.xlu0 %446, %v382_v4   ;;  %s222_s5 = scalar_select %p221_p0, %s517_s12, 1 }
  0x28   : > { %p449_p2 = pnand %p448_p1, %p583_p5  ;;  %s528_s12 = smov [#allocation3]  }
  0x29   : > { %s388_s6 = sshll.u32 %s222_s5, 4  ;;  %s451_s28 = sshll.u32 %s528_s12, 4  ;;  %s452_s28 = int_to_ptr.vmem [resolvable:$false] %s451_s28 }
  0x2a   : > { %s228_s15 = scalar_lea.vmem %s670_s0, %s388_s6  ;;  %p450_p3 = pneg %p449_p2 }
  0x2b   : > { %v231_v5 = vld [vmem:[%s228_s15] sm:$0xff]  ;;  %v232_v6 = vld [vmem:[%s228_s15 + $0x8] sm:$0xff]  ;;  %s453_s29 = scalar_lea.vmem %s452_s28, 512  ;;  %p454_p4 = scmp.lt.s32.totalorder %s622_s18, %s452_s28 }
  0x2c   : > { %p455_p6 = scmp.lt.s32.totalorder %s453_s29, %s447_s27 }
  0x2e   : > { %p456_p7 = por %p455_p6, %p454_p4 }
  0x30   : > { %p457_p8 = pnand %p456_p7, %p450_p3 }
  0xa2   : > { %v239_v7 = vpop.permute.xlu0 %238 }
  0xa3   : > { %v241_v8 = vmul.f32 %v239_v7, %v231_v5  ;;  %v242_v9 = vmul.f32 %v239_v7, %v232_v6 }
  0xa6   : > { %v246_v10 = vpop.permute.xlu0 %245 }
  0xa7   : > { %v248_v11 = vadd.f32 %v246_v10, %v241_v8  ;;  %v249_v12 = vadd.f32 %v246_v10, %v242_v9 }
  0xa9   : > { %v250_v13 = vmul.f32 7.6293945e-06, %v248_v11  ;;  %v251_v14 = vmul.f32 7.6293945e-06, %v249_v12 }
  0xab   : > { %v252_v15 = vfloor.f32 %v250_v13  ;;  %v253_v16 = vfloor.f32 %v251_v14 }
  0xad   : > { %v254_v17 = vmax.f32 %v252_v15, 0.0  ;;  %v255_v18 = vmax.f32 %v253_v16, 0.0 }
  0xaf   : > { %v256_v19 = vmin.f32 %v254_v17, 255.0  ;;  %v257_v20 = vmin.f32 %v255_v18, 255.0 }
  0xb1   : > { %258 = vst [vmem:[%s219_s16] sm:$0xff] %v256_v19  ;;  %259 = vst [vmem:[%s219_s16 + $0x8] sm:$0xff] %v257_v20 }
  0xb2   : > { %460 = shalt.err (!%p457_p8)
}
  0xb3   : > { %s461_s30 = scalar_lea.hbm %s620_s25, 256  ;;  %s465_s5 = scalar_lea.hbm %s672_s2, 512 }
  0xb4   : > { %p462_p11 = scmp.ne.s32.totalorder %s620_s25, %s461_s30  ;;  %p466_p0 = scmp.lt.u32.totalorder %s620_s25, %s672_s2 }
  0xb5   : > { %p467_p1 = scmp.lt.u32.totalorder %s465_s5, %s461_s30  ;;  %p469_p3 = scmp.lt.u32.totalorder %s461_s30, %s620_s25 }
  0xb6   : > { %p463_p12 = pnand %p462_p11, %p583_p5 }
  0xb7   : > { %p468_p2 = por %p467_p1, %p466_p0 }
  0xb8   : > { %p464_p13 = pneg %p463_p12 }
  0xb9   : > { %p470_p4 = por %p469_p3, %p468_p2 }
  0xbb   : > { %p471_p6 = pnand %p470_p4, %p464_p13 }
  0xbd   : > { %474 = shalt.err (!%p471_p6)
}
  0xbe   : > { %390 = dma.vmem_to_hbm [thread:$0]  (%p583_p5), %s622_s18, 256, %s620_s25, %s261_s26  }
  0xbf PF: > { %s289_s8 = sand.u32 1, %s505_s9   ;;  %p393_p7 = pnand %p374_p10, %p594_p9 }
  0xc0   : > { %s290_s15 = scalar_lea.sflag [#allocation4], %s289_s8 }
  0xc1   : > { %500 = dma.done.wait (!%p393_p7), %s290_s15, 256  }
  0xc2   : > { %502 = vsyncadd (!%p393_p7), %s290_s15, 4294967040  ;;  %s15_s14 = sadd.s32 1, %s525_s14   ;;  %s675_s9 = smov %s509_s10 }
  0xc3   : > { %p12_p8 = scmp.ge.s32.totalorder %s15_s14, 4   ;;  %s676_s10 = smov %s513_s11 }
  0xc4   : > { %s677_s11 = smov %s592_s21  ;;  %s678_s12 = smov %s521_s13 }
  0xc5   : > { %s679_s13 = smov %s681_s17  ;;  %14 = sbr.rel (!%p12_p8) target bundleno = 4 (0x4), region = 110 }
  0xcc   :  { %295 = vsyncpa [#allocation4], 1 }
  0xcd   :  { %297 = vsyncpa [#allocation4 + $0x1], 1 }

</bundles_post_ra>
